<compile_context>
chip_gen: v7x
topology: tpu7x:2x2x1
jax: 0.10.0
libtpu: 0.0.40
codegen_flags: <defaults>
</compile_context>

<pallas_src>
import functools
import math

import jax
import jax.numpy as jnp
from jax.experimental import pallas as pl
from jax.experimental.pallas import tpu as pltpu

NEG_INF = -1e9


def _round_up(x, m):
    return (x + m - 1) // m * m


# ----------------------- tiled linear: x @ w + b (opt ReLU) -----------------------

def _linear_kernel(x_ref, w_ref, b_ref, o_ref, acc_ref, *, relu):
    @pl.when(pl.program_id(2) == 0)
    def _():
        acc_ref[...] = jnp.zeros_like(acc_ref)

    acc_ref[...] += jnp.dot(x_ref[...], w_ref[...],
                            preferred_element_type=jnp.float32)

    @pl.when(pl.program_id(2) == pl.num_programs(2) - 1)
    def _():
        y = acc_ref[...] + b_ref[...]
        if relu:
            y = jnp.maximum(y, 0.0)
        o_ref[...] = y


def pallas_linear(x2d, w, b, relu=False, tm=256, tn=256, tk=512):
    """x2d: [M, K] @ w: [K, N] + b: [N] -> [M, N] float32, tiled over (M, N, K)."""
    M, K = x2d.shape
    N = w.shape[1]
    tm = min(tm, _round_up(M, 8))
    tn = min(tn, _round_up(N, 128))
    tk = min(tk, _round_up(K, 128))
    Mp, Kp, Np = _round_up(M, tm), _round_up(K, tk), _round_up(N, tn)

    xp = jnp.pad(x2d, ((0, Mp - M), (0, Kp - K))) if (Mp, Kp) != (M, K) else x2d
    wp = jnp.pad(w, ((0, Kp - K), (0, Np - N))) if (Kp, Np) != (K, N) else w
    bp = jnp.pad(b, (0, Np - N)).reshape(1, Np)

    out = pl.pallas_call(
        functools.partial(_linear_kernel, relu=relu),
        out_shape=jax.ShapeDtypeStruct((Mp, Np), jnp.float32),
        grid_spec=pltpu.PrefetchScalarGridSpec(
            num_scalar_prefetch=0,
            grid=(Mp // tm, Np // tn, Kp // tk),
            in_specs=[
                pl.BlockSpec((tm, tk), lambda i, j, k: (i, k)),
                pl.BlockSpec((tk, tn), lambda i, j, k: (k, j)),
                pl.BlockSpec((1, tn), lambda i, j, k: (0, j)),
            ],
            out_specs=pl.BlockSpec((tm, tn), lambda i, j, k: (i, j)),
            scratch_shapes=[pltpu.VMEM((tm, tn), jnp.float32)],
        ),
        compiler_params=pltpu.CompilerParams(
            dimension_semantics=("parallel", "parallel", "arbitrary"),
            vmem_limit_bytes=32 * 1024 * 1024,
        ),
    )(xp, wp, bp)
    return out[:M, :N]


# ----------------------- fused residual-add + LayerNorm -----------------------

def _add_ln_kernel(x_ref, r_ref, g_ref, b_ref, o_ref, *, eps):
    x = x_ref[...] + r_ref[...]
    mu = jnp.mean(x, axis=-1, keepdims=True)
    var = jnp.mean((x - mu) ** 2, axis=-1, keepdims=True)
    o_ref[...] = (x - mu) * jax.lax.rsqrt(var + eps) * g_ref[...] + b_ref[...]


def pallas_add_layernorm(x2d, r2d, gamma, beta, eps=1e-5, tm=512):
    """LayerNorm(x2d + r2d) * gamma + beta, row-tiled."""
    M, D = x2d.shape
    tm = min(tm, _round_up(M, 8))
    Mp = _round_up(M, tm)
    if Mp != M:
        x2d = jnp.pad(x2d, ((0, Mp - M), (0, 0)))
        r2d = jnp.pad(r2d, ((0, Mp - M), (0, 0)))
    out = pl.pallas_call(
        functools.partial(_add_ln_kernel, eps=eps),
        out_shape=jax.ShapeDtypeStruct((Mp, D), jnp.float32),
        grid=(Mp // tm,),
        in_specs=[
            pl.BlockSpec((tm, D), lambda i: (i, 0)),
            pl.BlockSpec((tm, D), lambda i: (i, 0)),
            pl.BlockSpec((1, D), lambda i: (0, 0)),
            pl.BlockSpec((1, D), lambda i: (0, 0)),
        ],
        out_specs=pl.BlockSpec((tm, D), lambda i: (i, 0)),
        compiler_params=pltpu.CompilerParams(dimension_semantics=("parallel",)),
    )(x2d, r2d, gamma.reshape(1, D), beta.reshape(1, D))
    return out[:M]


# ----------------------- fused FFN: relu(x@w1+b1)@w2+b2 -----------------------

def _ffn_kernel(x_ref, w1_ref, b1_ref, w2_ref, b2_ref, o_ref):
    h = jnp.dot(x_ref[...], w1_ref[...], preferred_element_type=jnp.float32) + b1_ref[...]
    h = jnp.maximum(h, 0.0)
    o_ref[...] = jnp.dot(h, w2_ref[...], preferred_element_type=jnp.float32) + b2_ref[...]


def pallas_ffn(x2d, p1, p2, tm=256):
    """Feed-forward block with the [tm, d_hidden] intermediate kept in VMEM."""
    M, D = x2d.shape
    Hd = p1["w"].shape[1]
    tm = min(tm, _round_up(M, 8))
    Mp = _round_up(M, tm)
    xp = jnp.pad(x2d, ((0, Mp - M), (0, 0))) if Mp != M else x2d
    out = pl.pallas_call(
        _ffn_kernel,
        out_shape=jax.ShapeDtypeStruct((Mp, D), jnp.float32),
        grid=(Mp // tm,),
        in_specs=[
            pl.BlockSpec((tm, D), lambda i: (i, 0)),
            pl.BlockSpec((D, Hd), lambda i: (0, 0)),
            pl.BlockSpec((1, Hd), lambda i: (0, 0)),
            pl.BlockSpec((Hd, D), lambda i: (0, 0)),
            pl.BlockSpec((1, D), lambda i: (0, 0)),
        ],
        out_specs=pl.BlockSpec((tm, D), lambda i: (i, 0)),
        compiler_params=pltpu.CompilerParams(dimension_semantics=("parallel",)),
    )(xp, p1["w"], p1["b"].reshape(1, Hd), p2["w"], p2["b"].reshape(1, D))
    return out[:M]


# ----------------------- fused multi-head attention -----------------------

def _mha_kernel(q_ref, k_ref, v_ref, m_ref, o_ref, *, num_heads, scale, causal):
    q = q_ref[0]       # (Sq, D)  all heads packed along lanes
    k = k_ref[0]       # (Sk, D)
    v = v_ref[0]       # (Sk, D)
    kmask = m_ref[0]   # (1, Sk)  additive key-padding mask (0 keep / -1e9 pad)
    Sq, D = q.shape
    Sk = k.shape[0]
    Dh = D // num_heads

    if causal:
        row = jax.lax.broadcasted_iota(jnp.int32, (Sq, Sk), 0)
        col = jax.lax.broadcasted_iota(jnp.int32, (Sq, Sk), 1)
        causal_mask = jnp.where(row >= col, 0.0, NEG_INF)

    outs = []
    for h in range(num_heads):          # static unroll over heads
        sl = slice(h * Dh, (h + 1) * Dh)
        s = jax.lax.dot_general(q[:, sl], k[:, sl], (((1,), (1,)), ((), ())),
                                preferred_element_type=jnp.float32)
        s = s * scale + kmask
        if causal:
            s = s + causal_mask
        s = s - jnp.max(s, axis=-1, keepdims=True)
        p = jnp.exp(s)
        p = p * pl.reciprocal(jnp.sum(p, axis=-1, keepdims=True), approx=True)
        outs.append(jnp.dot(p, v[:, sl], preferred_element_type=jnp.float32))
    o_ref[0] = jnp.concatenate(outs, axis=-1)   # single lane-dense [Sq, D] store


def pallas_attention(q, k, v, key_mask, num_heads, causal):
    """q: [B, Sq, D], k/v: [B, Sk, D], key_mask: [B, 1, Sk] additive -> [B, Sq, D]."""
    B, Sq, D = q.shape
    Sk = k.shape[1]
    scale = 1.0 / math.sqrt(D // num_heads)
    return pl.pallas_call(
        functools.partial(_mha_kernel, num_heads=num_heads, scale=scale, causal=causal),
        out_shape=jax.ShapeDtypeStruct((B, Sq, D), jnp.float32),
        grid=(B,),
        in_specs=[
            pl.BlockSpec((1, Sq, D), lambda b: (b, 0, 0)),
            pl.BlockSpec((1, Sk, D), lambda b: (b, 0, 0)),
            pl.BlockSpec((1, Sk, D), lambda b: (b, 0, 0)),
            pl.BlockSpec((1, 1, Sk), lambda b: (b, 0, 0)),
        ],
        out_specs=pl.BlockSpec((1, Sq, D), lambda b: (b, 0, 0)),
        compiler_params=pltpu.CompilerParams(dimension_semantics=("parallel",)),
    )(q, k, v, key_mask)


# ------------------------------ Model glue ------------------------------

def positional_encoding(S, D):
    pos = jnp.arange(S, dtype=jnp.float32)[:, None]
    i = jnp.arange(D)[None, :]
    angle = pos / jnp.power(10000.0, (2 * (i // 2)).astype(jnp.float32) / D)
    return jnp.where(i % 2 == 0, jnp.sin(angle), jnp.cos(angle))  # [S, D]


def sentence_embedding(tokens, emb_table, d_model):
    x = emb_table[tokens] * math.sqrt(d_model)            # gather (glue)
    pe = positional_encoding(tokens.shape[1], d_model)
    return x + pe[None, :, :]


def key_padding_mask(tok):
    """[B, S] int tokens -> [B, 1, S] additive mask (0 keep, -1e9 at PAD)."""
    return jnp.where(tok == 0, NEG_INF, 0.0).astype(jnp.float32)[:, None, :]


def self_attention(x, key_mask, p, num_heads, causal):
    B, S, D = x.shape
    wqkv = jnp.concatenate([p["q"]["w"], p["k"]["w"], p["v"]["w"]], axis=1)   # [D, 3D]
    bqkv = jnp.concatenate([p["q"]["b"], p["k"]["b"], p["v"]["b"]])
    qkv = pallas_linear(x.reshape(-1, D), wqkv, bqkv).reshape(B, S, 3 * D)
    q, k, v = qkv[..., :D], qkv[..., D:2 * D], qkv[..., 2 * D:]
    attn = pallas_attention(q, k, v, key_mask, num_heads, causal)
    out = pallas_linear(attn.reshape(-1, D), p["o"]["w"], p["o"]["b"])
    return out.reshape(B, S, D)


def cross_attention(y, enc, key_mask, p, num_heads):
    B, Sq, D = y.shape
    Sk = enc.shape[1]
    q = pallas_linear(y.reshape(-1, D), p["q"]["w"], p["q"]["b"]).reshape(B, Sq, D)
    wkv = jnp.concatenate([p["k"]["w"], p["v"]["w"]], axis=1)                 # [D, 2D]
    bkv = jnp.concatenate([p["k"]["b"], p["v"]["b"]])
    kv = pallas_linear(enc.reshape(-1, D), wkv, bkv).reshape(B, Sk, 2 * D)
    k, v = kv[..., :D], kv[..., D:]
    attn = pallas_attention(q, k, v, key_mask, num_heads, causal=False)
    out = pallas_linear(attn.reshape(-1, D), p["o"]["w"], p["o"]["b"])
    return out.reshape(B, Sq, D)


def encoder_layer(x, src_kmask, p, H):
    B, S, D = x.shape
    a = self_attention(x, src_kmask, p["mha"], H, causal=False)
    x = pallas_add_layernorm(x.reshape(-1, D), a.reshape(-1, D),
                             p["ln1"]["g"], p["ln1"]["b"]).reshape(B, S, D)
    f = pallas_ffn(x.reshape(-1, D), p["ff1"], p["ff2"]).reshape(B, S, D)
    return pallas_add_layernorm(x.reshape(-1, D), f.reshape(-1, D),
                                p["ln2"]["g"], p["ln2"]["b"]).reshape(B, S, D)


def decoder_layer(y, enc, dst_kmask, src_kmask, p, H):
    B, S, D = y.shape
    a = self_attention(y, dst_kmask, p["self_mha"], H, causal=True)
    y = pallas_add_layernorm(y.reshape(-1, D), a.reshape(-1, D),
                             p["ln1"]["g"], p["ln1"]["b"]).reshape(B, S, D)
    c = cross_attention(y, enc, src_kmask, p["cross_mha"], H)
    y = pallas_add_layernorm(y.reshape(-1, D), c.reshape(-1, D),
                             p["ln2"]["g"], p["ln2"]["b"]).reshape(B, S, D)
    f = pallas_ffn(y.reshape(-1, D), p["ff1"], p["ff2"]).reshape(B, S, D)
    return pallas_add_layernorm(y.reshape(-1, D), f.reshape(-1, D),
                                p["ln3"]["g"], p["ln3"]["b"]).reshape(B, S, D)


def transformer_forward(params, src_tok, dst_tok, cfg):
    H = cfg["num_heads"]
    D = cfg["d_model"]
    Vd = cfg["dst_vocab_size"]

    x = sentence_embedding(src_tok, params["src_emb"], D)
    y = sentence_embedding(dst_tok, params["dst_emb"], D)

    # Only [B, 1, S] key-padding masks hit HBM; the causal part is built in-kernel.
    src_kmask = key_padding_mask(src_tok)
    dst_kmask = key_padding_mask(dst_tok)

    for lp in params["encoder"]:
        x = encoder_layer(x, src_kmask, lp, H)
    for lp in params["decoder"]:
        y = decoder_layer(y, x, dst_kmask, src_kmask, lp, H)

    B, S, _ = y.shape
    out = pallas_linear(
        y.reshape(-1, D), params["out"]["w"], params["out"]["b"]
    ).reshape(B, S, Vd)

    # one-hot target construction from the PyTorch forward() tail
    y_token = dst_tok
    token_mask = (y_token != 0).astype(jnp.int32)
    ignore_padding_mask = y_token == 0
    y_onehot_padded = jax.nn.one_hot(y_token - token_mask, Vd, dtype=jnp.int32)
    y_onehot = jnp.where(
        ignore_padding_mask[..., None],
        jnp.zeros_like(y_onehot_padded),
        y_onehot_padded,
    )
    return out, y_onehot


# --------------------------- Parameter creation ---------------------------

def init_params(key, V_src, V_dst, d_model, d_hidden, num_heads, Nx):
    keys = iter(jax.random.split(key, 256))

    def dense(kin, kout):
        w = jax.random.normal(next(keys), (kin, kout), jnp.float32) / math.sqrt(kin)
        return {"w": w, "b": jnp.zeros((kout,), jnp.float32)}

    def mha_params():
        return {
            "q": dense(d_model, d_model),
            "k": dense(d_model, d_model),
            "v": dense(d_model, d_model),
            "o": dense(d_model, d_model),
        }

    def ln_params():
        return {"g": jnp.ones((d_model,), jnp.float32),
                "b": jnp.zeros((d_model,), jnp.float32)}

    def enc_layer():
        return {"mha": mha_params(), "ln1": ln_params(),
                "ff1": dense(d_model, d_hidden), "ff2": dense(d_hidden, d_model),
                "ln2": ln_params()}

    def dec_layer():
        return {"self_mha": mha_params(), "ln1": ln_params(),
                "cross_mha": mha_params(), "ln2": ln_params(),
                "ff1": dense(d_model, d_hidden), "ff2": dense(d_hidden, d_model),
                "ln3": ln_params()}

    return {
        "src_emb": jax.random.normal(next(keys), (V_src + 1, d_model), jnp.float32) * 0.02,
        "dst_emb": jax.random.normal(next(keys), (V_dst + 1, d_model), jnp.float32) * 0.02,
        "encoder": [enc_layer() for _ in range(Nx)],
        "decoder": [dec_layer() for _ in range(Nx)],
        "out": dense(d_model, V_dst),
    }


def add_start_end_token(dst_body, max_seq_len, start_id=1, end_id=2):
    B, _ = dst_body.shape
    seq = jnp.concatenate(
        [jnp.full((B, 1), start_id, jnp.int32),
         dst_body.astype(jnp.int32),
         jnp.full((B, 1), end_id, jnp.int32)],
        axis=1,
    )
    if seq.shape[1] < max_seq_len:
        seq = jnp.pad(seq, ((0, 0), (0, max_seq_len - seq.shape[1])))
    return seq[:, :max_seq_len]


# ---------------------------------- main ----------------------------------

if __name__ == "__main__":
    cfg = dict(
        batch_size=2, max_seq_len=8, d_model=32, Nx=2, d_hidden=64,
        num_heads=4, p_drop=0.1, src_vocab_size=17, dst_vocab_size=19,
    )
    key = jax.random.PRNGKey(0)
    kp, ks, kd = jax.random.split(key, 3)

    params = init_params(
        kp, cfg["src_vocab_size"], cfg["dst_vocab_size"],
        cfg["d_model"], cfg["d_hidden"], cfg["num_heads"], cfg["Nx"],
    )

    B, S = cfg["batch_size"], cfg["max_seq_len"]
    src_tok = jax.random.randint(ks, (B, S), 1, cfg["src_vocab_size"] + 1).astype(jnp.int32)
    src_tok = src_tok.at[:, -2:].set(0)  # trailing padding
    dst_body = jax.random.randint(kd, (B, S - 3), 3, cfg["dst_vocab_size"] + 1).astype(jnp.int32)
    dst_tok = add_start_end_token(dst_body, S)

    out, y_onehot = transformer_forward(params, src_tok, dst_tok, cfg)
    jax.block_until_ready((out, y_onehot))

    assert out.shape == (B, S, cfg["dst_vocab_size"])
    assert y_onehot.shape == (B, S, cfg["dst_vocab_size"])
    assert out.dtype == jnp.float32
    assert bool(jnp.all(jnp.isfinite(out)))
    print("KERNEL_OK")
</pallas_src>

<mosaic_0001>
module attributes {stable_mosaic.version = 11 : i64} {
  func.func @_linear_kernel(%arg0: i32, %arg1: i32, %arg2: i32, %arg3: memref<16x128xf32, #tpu.memory_space<vmem>>, %arg4: memref<128x128xf32, #tpu.memory_space<vmem>>, %arg5: memref<1x128xf32, #tpu.memory_space<vmem>>, %arg6: memref<16x128xf32, #tpu.memory_space<vmem>>, %arg7: memref<16x128xf32, #tpu.memory_space<vmem>>) attributes {dimension_semantics = [#tpu.dimension_semantics<parallel>, #tpu.dimension_semantics<parallel>, #tpu.dimension_semantics<arbitrary>], iteration_bounds = array<i64: 1, 1, 1>, scalar_prefetch = 0 : i64, scratch_operands = 1 : i64, tpu.core_type = #tpu.core_type<tc>, window_params = [{transform_indices = @transform_0, window_bounds = array<i64: 16, 128>}, {transform_indices = @transform_1, window_bounds = array<i64: 128, 128>}, {transform_indices = @transform_2, window_bounds = array<i64: 1, 128>}, {transform_indices = @transform_3, window_bounds = array<i64: 16, 128>}]} {
    %c0_i32 = arith.constant 0 : i32
    %0 = arith.cmpi eq, %arg2, %c0_i32 : i32
    %1 = arith.extui %0 : i1 to i32
    %c0_i32_0 = arith.constant 0 : i32
    %2 = arith.cmpi ne, %1, %c0_i32_0 : i32
    scf.if %2 {
      %cst_10 = arith.constant 0.000000e+00 : f32
      %12 = vector.broadcast %cst_10 : f32 to vector<16x128xf32>
      %c0_11 = arith.constant 0 : index
      %c0_12 = arith.constant 0 : index
      %13 = vector.load %arg7[%c0_11, %c0_12] : memref<16x128xf32, #tpu.memory_space<vmem>>, vector<16x128xf32>
      tpu.vector_store %arg7[%c0_11, %c0_12], %12 {strides = array<i32>} : memref<16x128xf32, #tpu.memory_space<vmem>>, vector<16x128xf32>,
    } else {
    }
    %c0 = arith.constant 0 : index
    %c0_1 = arith.constant 0 : index
    %3 = vector.load %arg7[%c0, %c0_1] : memref<16x128xf32, #tpu.memory_space<vmem>>, vector<16x128xf32>
    %c0_2 = arith.constant 0 : index
    %c0_3 = arith.constant 0 : index
    %4 = vector.load %arg3[%c0_2, %c0_3] : memref<16x128xf32, #tpu.memory_space<vmem>>, vector<16x128xf32>
    %c0_4 = arith.constant 0 : index
    %c0_5 = arith.constant 0 : index
    %5 = vector.load %arg4[%c0_4, %c0_5] : memref<128x128xf32, #tpu.memory_space<vmem>>, vector<128x128xf32>
    %cst = arith.constant dense<0.000000e+00> : vector<16x128xf32>
    %6 = tpu.matmul %4, %5, %cst {dimension_numbers = #tpu.dot_dimension_numbers<[1], [0], [0], [1], [0, 0, 1, 1], [], []>} : vector<16x128xf32>, vector<128x128xf32>, vector<16x128xf32> -> vector<16x128xf32>
    %7 = arith.addf %3, %6 : vector<16x128xf32>
    %c0_6 = arith.constant 0 : index
    %c0_7 = arith.constant 0 : index
    %8 = vector.load %arg7[%c0_6, %c0_7] : memref<16x128xf32, #tpu.memory_space<vmem>>, vector<16x128xf32>
    tpu.vector_store %arg7[%c0_6, %c0_7], %7 {strides = array<i32>} : memref<16x128xf32, #tpu.memory_space<vmem>>, vector<16x128xf32>,
    %c0_i32_8 = arith.constant 0 : i32
    %9 = arith.cmpi eq, %arg2, %c0_i32_8 : i32
    %10 = arith.extui %9 : i1 to i32
    %c0_i32_9 = arith.constant 0 : i32
    %11 = arith.cmpi ne, %10, %c0_i32_9 : i32
    scf.if %11 {
      %c0_10 = arith.constant 0 : index
      %c0_11 = arith.constant 0 : index
      %12 = vector.load %arg7[%c0_10, %c0_11] : memref<16x128xf32, #tpu.memory_space<vmem>>, vector<16x128xf32>
      %c0_12 = arith.constant 0 : index
      %c0_13 = arith.constant 0 : index
      %13 = vector.load %arg5[%c0_12, %c0_13] : memref<1x128xf32, #tpu.memory_space<vmem>>, vector<1x128xf32>
      %14 = vector.broadcast %13 : vector<1x128xf32> to vector<16x128xf32>
      %15 = arith.addf %12, %14 : vector<16x128xf32>
      %c0_14 = arith.constant 0 : index
      %c0_15 = arith.constant 0 : index
      %16 = vector.load %arg6[%c0_14, %c0_15] : memref<16x128xf32, #tpu.memory_space<vmem>>, vector<16x128xf32>
      tpu.vector_store %arg6[%c0_14, %c0_15], %15 {strides = array<i32>} : memref<16x128xf32, #tpu.memory_space<vmem>>, vector<16x128xf32>,
    } else {
    }
    return
  }
  func.func @transform_0(%arg0: i32, %arg1: i32, %arg2: i32) -> (i32, i32) {
    %c0_i32 = arith.constant 0 : i32
    return %arg0, %arg2 : i32, i32
  }
  func.func @transform_1(%arg0: i32, %arg1: i32, %arg2: i32) -> (i32, i32) {
    %c0_i32 = arith.constant 0 : i32
    return %arg2, %arg1 : i32, i32
  }
  func.func @transform_2(%arg0: i32, %arg1: i32, %arg2: i32) -> (i32, i32) {
    %c0_i32 = arith.constant 0 : i32
    %c0_i32_0 = arith.constant 0 : i32
    return %c0_i32, %arg1 : i32, i32
  }
  func.func @transform_3(%arg0: i32, %arg1: i32, %arg2: i32) -> (i32, i32) {
    %c0_i32 = arith.constant 0 : i32
    return %arg0, %arg1 : i32, i32
  }
}

</mosaic_0001>

<bundles_post_ra>
// kernel: tpu_custom_call.1
= control target key start
LH: loop header
LB: loop body
LE: loop exit
PB: predicated region body
PF: predicated region fallthrough
CT: control target
= control target key end

     0   :  { %8 = vsyncpa [#allocation4], 0  ;;  %s418_s0 = inlined_call_operand.hbm [shape: f32[16,128], index: 0, kind: input, shape index: {}]   ;;  %s419_s1 = inlined_call_operand.hbm [shape: f32[128,128], index: 1, kind: input, shape index: {}]   ;;  %s420_s2 = inlined_call_operand.vmem [shape: f32[1,128], index: 2, kind: input, shape index: {}]   ;;  %s421_s3 = inlined_call_operand.hbm [shape: f32[16,128], index: 3, kind: output, shape index: {}]  }
   0x1   :  { %9 = vsyncpa [#allocation7], 0 }
   0x2   :  { %10 = vsyncpa [#allocation5], 0  ;;  %s345_s12 = smov [#allocation3]   ;;  %s273_s16 = scalar_lea.hbm %s418_s0, 256 }
   0x3   :  { %s16_s13 = sshll.u32 %s345_s12, 4  ;;  %p274_p0 = scmp.ne.s32.totalorder %s418_s0, %s273_s16  ;;  %s17_s13 = int_to_ptr.vmem [resolvable:$true] %s16_s13 }
   0x4   :  { %p277_p1 = scmp.lt.u32.totalorder %s273_s16, %s418_s0 }
   0x6   :  { %p279_p2 = pnand %p277_p1, %p274_p0 }
   0x8   :  { %282 = shalt.err (!%p279_p2)
}
   0x9   :  { %s283_s21 = scalar_lea.vmem %s17_s13, 256  ;;  %p288_p4 = scmp.lt.s32.totalorder %s17_s13, %s17_s13 }
   0xa   :  { %p284_p3 = scmp.ne.s32.totalorder %s17_s13, %s283_s21  ;;  %p289_p5 = scmp.lt.s32.totalorder %s283_s21, %s283_s21 }
   0xc   :  { %p290_p6 = por %p289_p5, %p288_p4 }
   0xe   :  { %p291_p7 = pnand %p290_p6, %p284_p3 }
  0x10   :  { %294 = shalt.err (!%p291_p7)
}
  0x11   :  { %s346_s22 = smov 128   ;;  %s347_s23 = smov 8  }
  0x12   :  { %22 = dma.hbm_to_vmem [thread:$0]  %s418_s0, 256, %s17_s13, [#allocation4], %s346_s22, %s346_s22, %s347_s23  }
  0x13   :  { %s348_s26 = smov [#allocation6]   ;;  %s295_s30 = scalar_lea.hbm %s419_s1, 2048 }
  0x14   :  { %s28_s27 = sshll.u32 %s348_s26, 4  ;;  %p296_p8 = scmp.ne.s32.totalorder %s419_s1, %s295_s30  ;;  %s29_s27 = int_to_ptr.vmem [resolvable:$true] %s28_s27 }
  0x15   :  { %p299_p9 = scmp.lt.u32.totalorder %s295_s30, %s419_s1 }
  0x17   :  { %p301_p10 = pnand %p299_p9, %p296_p8 }
  0x19   :  { %304 = shalt.err (!%p301_p10)
}
  0x1a   :  { %s305_s8 = scalar_lea.vmem %s29_s27, 2048  ;;  %p310_p12 = scmp.lt.s32.totalorder %s29_s27, %s29_s27 }
  0x1b   :  { %p306_p11 = scmp.ne.s32.totalorder %s29_s27, %s305_s8  ;;  %p311_p13 = scmp.lt.s32.totalorder %s305_s8, %s305_s8 }
  0x1d   :  { %p312_p0 = por %p311_p13, %p310_p12 }
  0x1f   :  { %p313_p1 = pnand %p312_p0, %p306_p11 }
  0x21   :  { %316 = shalt.err (!%p313_p1)
}
  0x22   :  { %34 = dma.hbm_to_vmem [thread:$0]  %s419_s1, 2048, %s29_s27, [#allocation7], %s346_s22, %s346_s22, %s347_s23  }
  0x23   :  { %339 = dma.done.wait [#allocation4], 256  }
  0x24   :  { %340 = vsyncadd [#allocation4], 4294967040 }
  0x25   :  { %341 = dma.done.wait [#allocation7], 2048  }
  0x26   :  { %342 = vsyncadd [#allocation7], 4294965248  ;;  %v53_v0 = vld [vmem:[#allocation6] sm:$0xff]  ;;  %v54_v1 = vld [vmem:[#allocation6 + $0x8] sm:$0xff]  ;;  %s349_s11 = smov [#allocation8]  }
  0x27   :  { %v55_v2 = vld [vmem:[#allocation6 + $0x10] sm:$0xff]  ;;  %v236_v3 = vpack.c.bf16 %v54_v1, %v53_v0  ;;  %v56_v4 = vld [vmem:[#allocation6 + $0x18] sm:$0xff]  ;;  %v57_v6 = vld [vmem:[#allocation6 + $0x20] sm:$0xff]  ;;  %s169_s12 = sshll.u32 %s349_s11, 4  ;;  %s170_s12 = int_to_ptr.vmem [resolvable:$true] %s169_s12 }
  0x28   :  { %v240_v5 = vpack.c.bf16 %v56_v4, %v55_v2  ;;  %v58_v7 = vld [vmem:[#allocation6 + $0x28] sm:$0xff]  ;;  %v51_v9 = vld [vmem:[#allocation3] sm:$0xff]  ;;  %v60_v11 = vld [vmem:[#allocation6 + $0x38] sm:$0xff]  ;;  %s317_s13 = scalar_lea.vmem %s170_s12, 256  ;;  %p322_p3 = scmp.lt.s32.totalorder %s170_s12, %s170_s12 }
  0x29   :  { %237 = vmatprep.subr.bf16.mxu0 %v236_v3  ;;  %v244_v8 = vpack.c.bf16 %v58_v7, %v57_v6  ;;  %v59_v10 = vld [vmem:[#allocation6 + $0x30] sm:$0xff]  ;;  %233 = vmatprep.mubr.f32.mxu0 %v51_v9  ;;  %v61_v13 = vld [vmem:[#allocation6 + $0x40] sm:$0xff]  ;;  %v62_v14 = vld [vmem:[#allocation6 + $0x48] sm:$0xff]  ;;  %p318_p2 = scmp.ne.s32.totalorder %s170_s12, %s317_s13  ;;  %p323_p4 = scmp.lt.s32.totalorder %s317_s13, %s317_s13 }
  0x2a   :  { %239 = vmatpush3.bf16.msra.mxu0 %v236_v3  ;;  %v248_v12 = vpack.c.bf16 %v60_v11, %v59_v10  ;;  %v252_v15 = vpack.c.bf16 %v62_v14, %v61_v13  ;;  %v63_v16 = vld [vmem:[#allocation6 + $0x50] sm:$0xff]  ;;  %v64_v17 = vld [vmem:[#allocation6 + $0x58] sm:$0xff]  ;;  %v65_v19 = vld [vmem:[#allocation6 + $0x60] sm:$0xff] }
  0x2b   :  { %241 = vmatprep.subr.bf16.mxu0 %v240_v5  ;;  %v256_v18 = vpack.c.bf16 %v64_v17, %v63_v16  ;;  %v66_v20 = vld [vmem:[#allocation6 + $0x68] sm:$0xff]  ;;  %v67_v22 = vld [vmem:[#allocation6 + $0x70] sm:$0xff]  ;;  %v68_v23 = vld [vmem:[#allocation6 + $0x78] sm:$0xff]  ;;  %p324_p5 = por %p323_p4, %p322_p3 }
  0x2c   :  { %v260_v21 = vpack.c.bf16 %v66_v20, %v65_v19  ;;  %v264_v24 = vpack.c.bf16 %v68_v23, %v67_v22  ;;  %v52_v25 = vld [vmem:[#allocation3 + $0x8] sm:$0xff]  ;;  %v182_v26 = vld [vmem:[%s420_s2] ss:$0 sm:$0xff] }
  0x2d   :  { %p325_p6 = pnand %p324_p5, %p318_p2 }
  0x2e   :  { %243 = vmatpush3.bf16.msra.mxu0 %v240_v5 }
  0x2f   :  { %245 = vmatprep.subr.bf16.mxu0 %v244_v8 }
  0x32   :  { %247 = vmatpush3.bf16.msra.mxu0 %v244_v8 }
  0x33   :  { %249 = vmatprep.subr.bf16.mxu0 %v248_v12 }
  0x36   :  { %251 = vmatpush3.bf16.msra.mxu0 %v248_v12 }
  0x37   :  { %253 = vmatprep.subr.bf16.mxu0 %v252_v15 }
  0x3a   :  { %255 = vmatpush3.bf16.msra.mxu0 %v252_v15 }
  0x3b   :  { %257 = vmatprep.subr.bf16.mxu0 %v256_v18 }
  0x3e   :  { %259 = vmatpush3.bf16.msra.mxu0 %v256_v18 }
  0x3f   :  { %261 = vmatprep.subr.bf16.mxu0 %v260_v21 }
  0x42   :  { %263 = vmatpush3.bf16.msra.mxu0 %v260_v21 }
  0x43   :  { %265 = vmatprep.subr.bf16.mxu0 %v264_v24 }
  0x46   :  { %267 = vmatpush3.bf16.msra.mxu0 %v264_v24 }
  0x49   :  { %234 = vmatmul.mubr.f32.vlgmr.msra.gmra.mrb[0].mxu0 %v52_v25 }
 0x11c   :  { %v235_v27 = vpop.f32.mrb[0].mxu0 }
 0x11d   :  { %v161_v28 = vadd.f32 %v235_v27, %v182_v26  ;;  %v135_v29 = vpop.f32.mrb[1].mxu0 }
 0x11e   :  { %v160_v30 = vadd.f32 %v182_v26, %v135_v29 }
 0x11f   :  { %163 = vst [vmem:[#allocation8 + $0x8] sm:$0xff] %v161_v28 }
 0x120   :  { %162 = vst [vmem:[#allocation8] sm:$0xff] %v160_v30 }
 0x121   :  { %328 = shalt.err (!%p325_p6)
}
 0x122   :  { %s329_s2 = scalar_lea.hbm %s421_s3, 256 }
 0x123   :  { %p330_p7 = scmp.ne.s32.totalorder %s421_s3, %s329_s2  ;;  %p333_p8 = scmp.lt.u32.totalorder %s329_s2, %s421_s3 }
 0x125   :  { %p335_p9 = pnand %p333_p8, %p330_p7 }
 0x127   :  { %338 = shalt.err (!%p335_p9)
}
 0x128   :  { %175 = dma.vmem_to_hbm [thread:$0]  %s170_s12, 256, %s421_s3, [#allocation5], %s346_s22, %s346_s22, %s347_s23  }
 0x129   :  { %343 = dma.done.wait [#allocation5], 256  }
 0x12a   :  { %344 = vsyncadd [#allocation5], 4294967040 }
 0x12b   :  { %179 = vsyncpa [#allocation4], 1 }
 0x12c   :  { %180 = vsyncpa [#allocation7], 1 }
 0x12d   :  { %181 = vsyncpa [#allocation5], 1 }

</bundles_post_ra>
